<compile_context>
chip_gen: v7x
topology: tpu7x:2x2x1
jax: 0.10.0
libtpu: 0.0.40
codegen_flags: <defaults>
</compile_context>

<pallas_src>
import functools

import jax
import jax.numpy as jnp
from jax import lax
from jax.experimental import pallas as pl
from jax.experimental.pallas import tpu as pltpu


# ------------------------------ fused kernel --------------------------------

def _cross_attn_kernel(x_ref, wqkv_ref, bqkv_ref, wo_ref, bo_ref, o_ref, *,
                       batch, seq, num_heads):
    # x_ref    : (B*S, 3D)  columns = [query | key | value]
    # wqkv_ref : (3D, 3D)   block-diag [Wq_eff^T*scale ; Wk_eff^T ; Wv_eff^T]
    # bqkv_ref : (1, 3D)    [bq_eff*scale | bk_eff | bv_eff]
    # wo_ref   : (D, D)     out_proj weight, pre-transposed
    # bo_ref   : (1, D)
    # o_ref    : (B*S, D)
    d = o_ref.shape[-1]
    dh = d // num_heads

    # One MXU push for all three fused (fc ∘ in_proj) projections, all batches.
    qkv = (jnp.dot(x_ref[...], wqkv_ref[...],
                   preferred_element_type=jnp.float32) + bqkv_ref[...])
    q = qkv[:, 0:d]                     # 1/sqrt(dh) already folded into weights
    k = qkv[:, d:2 * d]
    v = qkv[:, 2 * d:3 * d]

    contract_last = (((1,), (1,)), ((), ()))    # QK^T without an XLU transpose

    # Per-(batch, head) attention; head outputs are packed back into a
    # lane-dense (B*S, D) slab so the out-projection is a single K=D matmul.
    # TODO(synk): at production B/H sizes switch this unrolled Python loop to a
    #             grid axis / lax.fori_loop and keep dh a multiple of 128 so
    #             the head slices become tile-aligned views.
    rows = []
    for b in range(batch):
        rs = slice(b * seq, (b + 1) * seq)
        heads = []
        for h in range(num_heads):
            cs = slice(h * dh, (h + 1) * dh)
            qh = q[rs, cs]
            kh = k[rs, cs]
            vh = v[rs, cs]
            sc = lax.dot_general(qh, kh, contract_last,
                                 preferred_element_type=jnp.float32)
            sc = sc - jnp.max(sc, axis=-1, keepdims=True)
            p = jnp.exp(sc)
            p = p / jnp.sum(p, axis=-1, keepdims=True)       # exact softmax
            heads.append(jnp.dot(p, vh, preferred_element_type=jnp.float32))
        rows.append(jnp.concatenate(heads, axis=-1))         # (S, D)
    attn = jnp.concatenate(rows, axis=0)                     # (B*S, D)

    # Single out-projection matmul (one weight push, contraction K = D).
    out = jnp.dot(attn, wo_ref[...],
                  preferred_element_type=jnp.float32) + bo_ref[...]
    # TODO(synk): with D=32 this store is masked (32/128 lanes); the cost
    #             vanishes once D >= 128 in production.
    o_ref[...] = out.astype(o_ref.dtype)


def cross_attention(wqkv, bqkv, wo_t, bo, query, key, value, num_heads):
    """Fused CrossAttention forward. query/key/value: (B, S, D) -> (B, S, D)."""
    b, s, d = query.shape
    # Fold batch into rows and fuse the three input streams along lanes so the
    # whole forward is one grid-less pallas_call (no per-grid-step overhead,
    # one input DMA stream instead of three).
    x = jnp.concatenate([query, key, value], axis=-1).reshape(b * s, 3 * d)
    kern = functools.partial(_cross_attn_kernel, batch=b, seq=s,
                             num_heads=num_heads)
    vmem = pltpu.MemorySpace.VMEM
    out = pl.pallas_call(
        kern,
        out_shape=jax.ShapeDtypeStruct((b * s, d), query.dtype),
        in_specs=[pl.BlockSpec(memory_space=vmem)] * 5,
        out_specs=pl.BlockSpec(memory_space=vmem),
    )(x, wqkv, bqkv, wo_t, bo)
    return out.reshape(b, s, d)


# --------------------------- parameters & prep ------------------------------

def init_params(key, model_dim):
    ks = jax.random.split(key, 10)
    u = lambda k, shape, lim: jax.random.uniform(k, shape, jnp.float32, -lim, lim)
    lim = 1.0 / (model_dim ** 0.5)
    return {
        "wq": u(ks[0], (model_dim, model_dim), lim),
        "bq": u(ks[1], (model_dim,), lim),
        "wk": u(ks[2], (model_dim, model_dim), lim),
        "bk": u(ks[3], (model_dim,), lim),
        "wv": u(ks[4], (model_dim, model_dim), lim),
        "bv": u(ks[5], (model_dim,), lim),
        # nn.MultiheadAttention params (packed in_proj + out_proj)
        "in_proj_w": u(ks[6], (3 * model_dim, model_dim), lim),
        "in_proj_b": u(ks[7], (3 * model_dim,), lim),
        "out_proj_w": u(ks[8], (model_dim, model_dim), lim),
        "out_proj_b": u(ks[9], (model_dim,), lim),
    }


def prepare_params(params, num_heads):
    """One-time prep: compose fc∘in_proj, fold softmax scale, pack block-diag QKV."""
    d = params["wq"].shape[0]
    dh = d // num_heads
    scale = 1.0 / (dh ** 0.5)

    wiq, wik, wiv = jnp.split(params["in_proj_w"], 3, axis=0)
    biq, bik, biv = jnp.split(params["in_proj_b"], 3, axis=0)
    # lin(lin(x, W, b), Wi, bi) == x @ (Wi @ W)^T + (Wi @ b + bi);
    # the 1/sqrt(dh) scale is folded into the query branch (exact).
    wq_eff = (wiq @ params["wq"]) * scale
    bq_eff = (wiq @ params["bq"] + biq) * scale
    wk_eff = wik @ params["wk"]
    bk_eff = wik @ params["bk"] + bik
    wv_eff = wiv @ params["wv"]
    bv_eff = wiv @ params["bv"] + biv

    z = jnp.zeros((d, d), jnp.float32)
    # Block-diagonal fused projection: [xq|xk|xv] @ wqkv = [q|k|v].
    wqkv = jnp.block([[wq_eff.T, z, z],
                      [z, wk_eff.T, z],
                      [z, z, wv_eff.T]])                        # (3D, 3D)
    bqkv = jnp.concatenate([bq_eff, bk_eff, bv_eff])[None, :]   # (1, 3D)
    wo_t = params["out_proj_w"].T                               # (D, D)
    bo = params["out_proj_b"][None, :]                          # (1, D)
    return wqkv, bqkv, wo_t, bo


# ----------------------------- pure-JAX reference ----------------------------

def cross_attention_ref(params, query, key, value, num_heads):
    b, s, d = query.shape
    dh = d // num_heads
    lin = lambda x, w, bias: x @ w.T + bias
    q = lin(query, params["wq"], params["bq"])
    k = lin(key, params["wk"], params["bk"])
    v = lin(value, params["wv"], params["bv"])
    wiq, wik, wiv = jnp.split(params["in_proj_w"], 3, axis=0)
    biq, bik, biv = jnp.split(params["in_proj_b"], 3, axis=0)
    qp = lin(q, wiq, biq).reshape(b, s, num_heads, dh).transpose(0, 2, 1, 3)
    kp = lin(k, wik, bik).reshape(b, s, num_heads, dh).transpose(0, 2, 1, 3)
    vp = lin(v, wiv, biv).reshape(b, s, num_heads, dh).transpose(0, 2, 1, 3)
    sc = jnp.einsum("bhqd,bhkd->bhqk", qp, kp) / (dh ** 0.5)
    p = jax.nn.softmax(sc, axis=-1)
    o = jnp.einsum("bhqk,bhkd->bhqd", p, vp).transpose(0, 2, 1, 3).reshape(b, s, d)
    return lin(o, params["out_proj_w"], params["out_proj_b"])


# ----------------------------------- main ------------------------------------

if __name__ == "__main__":
    batch, seq, model_dim, num_heads = 2, 8, 32, 4

    root = jax.random.PRNGKey(0)
    kp, kq, kk, kv = jax.random.split(root, 4)
    params = init_params(kp, model_dim)
    wqkv, bqkv, wo_t, bo = prepare_params(params, num_heads)

    query = jax.random.normal(kq, (batch, seq, model_dim), jnp.float32)
    key_in = jax.random.normal(kk, (batch, seq, model_dim), jnp.float32)
    value = jax.random.normal(kv, (batch, seq, model_dim), jnp.float32)

    out = cross_attention(wqkv, bqkv, wo_t, bo, query, key_in, value, num_heads)
    out = jax.block_until_ready(out)

    ref = cross_attention_ref(params, query, key_in, value, num_heads)
    assert out.shape == (batch, seq, model_dim)
    assert jnp.allclose(out, ref, atol=2e-3, rtol=2e-3), "mismatch vs reference"

    print("KERNEL_OK")
</pallas_src>

<mosaic_0001>
module attributes {stable_mosaic.version = 11 : i64} {
  func.func @_cross_attn_kernel(%arg0: memref<16x96xf32, #tpu.memory_space<vmem>>, %arg1: memref<96x96xf32, #tpu.memory_space<vmem>>, %arg2: memref<1x96xf32, #tpu.memory_space<vmem>>, %arg3: memref<32x32xf32, #tpu.memory_space<vmem>>, %arg4: memref<1x32xf32, #tpu.memory_space<vmem>>, %arg5: memref<16x32xf32, #tpu.memory_space<vmem>>) attributes {dimension_semantics = [], scalar_prefetch = 0 : i64, scratch_operands = 0 : i64, tpu.core_type = #tpu.core_type<tc>} {
    %c0 = arith.constant 0 : index
    %c0_0 = arith.constant 0 : index
    %0 = vector.load %arg0[%c0, %c0_0] : memref<16x96xf32, #tpu.memory_space<vmem>>, vector<16x96xf32>
    %c0_1 = arith.constant 0 : index
    %c0_2 = arith.constant 0 : index
    %1 = vector.load %arg1[%c0_1, %c0_2] : memref<96x96xf32, #tpu.memory_space<vmem>>, vector<96x96xf32>
    %cst = arith.constant dense<0.000000e+00> : vector<16x96xf32>
    %2 = tpu.matmul %0, %1, %cst {dimension_numbers = #tpu.dot_dimension_numbers<[1], [0], [0], [1], [0, 0, 1, 1], [], []>} : vector<16x96xf32>, vector<96x96xf32>, vector<16x96xf32> -> vector<16x96xf32>
    %c0_3 = arith.constant 0 : index
    %c0_4 = arith.constant 0 : index
    %3 = vector.load %arg2[%c0_3, %c0_4] : memref<1x96xf32, #tpu.memory_space<vmem>>, vector<1x96xf32>
    %4 = vector.broadcast %3 : vector<1x96xf32> to vector<16x96xf32>
    %5 = arith.addf %2, %4 : vector<16x96xf32>
    %6 = vector.extract_strided_slice %5 {offsets = [0, 0], sizes = [16, 32], strides = [1, 1]} : vector<16x96xf32> to vector<16x32xf32>
    %7 = vector.extract_strided_slice %5 {offsets = [0, 32], sizes = [16, 32], strides = [1, 1]} : vector<16x96xf32> to vector<16x32xf32>
    %8 = vector.extract_strided_slice %5 {offsets = [0, 64], sizes = [16, 32], strides = [1, 1]} : vector<16x96xf32> to vector<16x32xf32>
    %9 = vector.extract_strided_slice %6 {offsets = [0, 0], sizes = [8, 8], strides = [1, 1]} : vector<16x32xf32> to vector<8x8xf32>
    %10 = vector.extract_strided_slice %7 {offsets = [0, 0], sizes = [8, 8], strides = [1, 1]} : vector<16x32xf32> to vector<8x8xf32>
    %11 = vector.extract_strided_slice %8 {offsets = [0, 0], sizes = [8, 8], strides = [1, 1]} : vector<16x32xf32> to vector<8x8xf32>
    %cst_5 = arith.constant dense<0.000000e+00> : vector<8x8xf32>
    %12 = tpu.matmul %9, %10, %cst_5 {dimension_numbers = #tpu.dot_dimension_numbers<[1], [1], [0], [0], [0, 0, 1, 0], [], []>} : vector<8x8xf32>, vector<8x8xf32>, vector<8x8xf32> -> vector<8x8xf32>
    %cst_6 = arith.constant dense<0xFF800000> : vector<8xf32>
    %13 = vector.multi_reduction <maximumf>, %12, %cst_6 [1] : vector<8x8xf32> to vector<8xf32>
    %14 = vector.shape_cast %13 : vector<8xf32> to vector<8x1xf32>
    %15 = vector.broadcast %14 : vector<8x1xf32> to vector<8x8xf32>
    %16 = arith.subf %12, %15 : vector<8x8xf32>
    %17 = math.exp %16 : vector<8x8xf32>
    %cst_7 = arith.constant dense<0.000000e+00> : vector<8xf32>
    %18 = vector.multi_reduction <add>, %17, %cst_7 [1] : vector<8x8xf32> to vector<8xf32>
    %19 = vector.shape_cast %18 : vector<8xf32> to vector<8x1xf32>
    %20 = vector.broadcast %19 : vector<8x1xf32> to vector<8x8xf32>
    %21 = arith.divf %17, %20 : vector<8x8xf32>
    %cst_8 = arith.constant dense<0.000000e+00> : vector<8x8xf32>
    %22 = tpu.matmul %21, %11, %cst_8 {dimension_numbers = #tpu.dot_dimension_numbers<[1], [0], [0], [1], [0, 0, 1, 1], [], []>} : vector<8x8xf32>, vector<8x8xf32>, vector<8x8xf32> -> vector<8x8xf32>
    %23 = vector.extract_strided_slice %6 {offsets = [0, 8], sizes = [8, 8], strides = [1, 1]} : vector<16x32xf32> to vector<8x8xf32>
    %24 = vector.extract_strided_slice %7 {offsets = [0, 8], sizes = [8, 8], strides = [1, 1]} : vector<16x32xf32> to vector<8x8xf32>
    %25 = vector.extract_strided_slice %8 {offsets = [0, 8], sizes = [8, 8], strides = [1, 1]} : vector<16x32xf32> to vector<8x8xf32>
    %cst_9 = arith.constant dense<0.000000e+00> : vector<8x8xf32>
    %26 = tpu.matmul %23, %24, %cst_9 {dimension_numbers = #tpu.dot_dimension_numbers<[1], [1], [0], [0], [0, 0, 1, 0], [], []>} : vector<8x8xf32>, vector<8x8xf32>, vector<8x8xf32> -> vector<8x8xf32>
    %cst_10 = arith.constant dense<0xFF800000> : vector<8xf32>
    %27 = vector.multi_reduction <maximumf>, %26, %cst_10 [1] : vector<8x8xf32> to vector<8xf32>
    %28 = vector.shape_cast %27 : vector<8xf32> to vector<8x1xf32>
    %29 = vector.broadcast %28 : vector<8x1xf32> to vector<8x8xf32>
    %30 = arith.subf %26, %29 : vector<8x8xf32>
    %31 = math.exp %30 : vector<8x8xf32>
    %cst_11 = arith.constant dense<0.000000e+00> : vector<8xf32>
    %32 = vector.multi_reduction <add>, %31, %cst_11 [1] : vector<8x8xf32> to vector<8xf32>
    %33 = vector.shape_cast %32 : vector<8xf32> to vector<8x1xf32>
    %34 = vector.broadcast %33 : vector<8x1xf32> to vector<8x8xf32>
    %35 = arith.divf %31, %34 : vector<8x8xf32>
    %cst_12 = arith.constant dense<0.000000e+00> : vector<8x8xf32>
    %36 = tpu.matmul %35, %25, %cst_12 {dimension_numbers = #tpu.dot_dimension_numbers<[1], [0], [0], [1], [0, 0, 1, 1], [], []>} : vector<8x8xf32>, vector<8x8xf32>, vector<8x8xf32> -> vector<8x8xf32>
    %37 = vector.extract_strided_slice %6 {offsets = [0, 16], sizes = [8, 8], strides = [1, 1]} : vector<16x32xf32> to vector<8x8xf32>
    %38 = vector.extract_strided_slice %7 {offsets = [0, 16], sizes = [8, 8], strides = [1, 1]} : vector<16x32xf32> to vector<8x8xf32>
    %39 = vector.extract_strided_slice %8 {offsets = [0, 16], sizes = [8, 8], strides = [1, 1]} : vector<16x32xf32> to vector<8x8xf32>
    %cst_13 = arith.constant dense<0.000000e+00> : vector<8x8xf32>
    %40 = tpu.matmul %37, %38, %cst_13 {dimension_numbers = #tpu.dot_dimension_numbers<[1], [1], [0], [0], [0, 0, 1, 0], [], []>} : vector<8x8xf32>, vector<8x8xf32>, vector<8x8xf32> -> vector<8x8xf32>
    %cst_14 = arith.constant dense<0xFF800000> : vector<8xf32>
    %41 = vector.multi_reduction <maximumf>, %40, %cst_14 [1] : vector<8x8xf32> to vector<8xf32>
    %42 = vector.shape_cast %41 : vector<8xf32> to vector<8x1xf32>
    %43 = vector.broadcast %42 : vector<8x1xf32> to vector<8x8xf32>
    %44 = arith.subf %40, %43 : vector<8x8xf32>
    %45 = math.exp %44 : vector<8x8xf32>
    %cst_15 = arith.constant dense<0.000000e+00> : vector<8xf32>
    %46 = vector.multi_reduction <add>, %45, %cst_15 [1] : vector<8x8xf32> to vector<8xf32>
    %47 = vector.shape_cast %46 : vector<8xf32> to vector<8x1xf32>
    %48 = vector.broadcast %47 : vector<8x1xf32> to vector<8x8xf32>
    %49 = arith.divf %45, %48 : vector<8x8xf32>
    %cst_16 = arith.constant dense<0.000000e+00> : vector<8x8xf32>
    %50 = tpu.matmul %49, %39, %cst_16 {dimension_numbers = #tpu.dot_dimension_numbers<[1], [0], [0], [1], [0, 0, 1, 1], [], []>} : vector<8x8xf32>, vector<8x8xf32>, vector<8x8xf32> -> vector<8x8xf32>
    %51 = vector.extract_strided_slice %6 {offsets = [0, 24], sizes = [8, 8], strides = [1, 1]} : vector<16x32xf32> to vector<8x8xf32>
    %52 = vector.extract_strided_slice %7 {offsets = [0, 24], sizes = [8, 8], strides = [1, 1]} : vector<16x32xf32> to vector<8x8xf32>
    %53 = vector.extract_strided_slice %8 {offsets = [0, 24], sizes = [8, 8], strides = [1, 1]} : vector<16x32xf32> to vector<8x8xf32>
    %cst_17 = arith.constant dense<0.000000e+00> : vector<8x8xf32>
    %54 = tpu.matmul %51, %52, %cst_17 {dimension_numbers = #tpu.dot_dimension_numbers<[1], [1], [0], [0], [0, 0, 1, 0], [], []>} : vector<8x8xf32>, vector<8x8xf32>, vector<8x8xf32> -> vector<8x8xf32>
    %cst_18 = arith.constant dense<0xFF800000> : vector<8xf32>
    %55 = vector.multi_reduction <maximumf>, %54, %cst_18 [1] : vector<8x8xf32> to vector<8xf32>
    %56 = vector.shape_cast %55 : vector<8xf32> to vector<8x1xf32>
    %57 = vector.broadcast %56 : vector<8x1xf32> to vector<8x8xf32>
    %58 = arith.subf %54, %57 : vector<8x8xf32>
    %59 = math.exp %58 : vector<8x8xf32>
    %cst_19 = arith.constant dense<0.000000e+00> : vector<8xf32>
    %60 = vector.multi_reduction <add>, %59, %cst_19 [1] : vector<8x8xf32> to vector<8xf32>
    %61 = vector.shape_cast %60 : vector<8xf32> to vector<8x1xf32>
    %62 = vector.broadcast %61 : vector<8x1xf32> to vector<8x8xf32>
    %63 = arith.divf %59, %62 : vector<8x8xf32>
    %cst_20 = arith.constant dense<0.000000e+00> : vector<8x8xf32>
    %64 = tpu.matmul %63, %53, %cst_20 {dimension_numbers = #tpu.dot_dimension_numbers<[1], [0], [0], [1], [0, 0, 1, 1], [], []>} : vector<8x8xf32>, vector<8x8xf32>, vector<8x8xf32> -> vector<8x8xf32>
    %65 = tpu.concatenate %22, %36, %50, %64 in 1 : vector<8x8xf32>, vector<8x8xf32>, vector<8x8xf32>, vector<8x8xf32> -> vector<8x32xf32>
    %66 = vector.extract_strided_slice %6 {offsets = [8, 0], sizes = [8, 8], strides = [1, 1]} : vector<16x32xf32> to vector<8x8xf32>
    %67 = vector.extract_strided_slice %7 {offsets = [8, 0], sizes = [8, 8], strides = [1, 1]} : vector<16x32xf32> to vector<8x8xf32>
    %68 = vector.extract_strided_slice %8 {offsets = [8, 0], sizes = [8, 8], strides = [1, 1]} : vector<16x32xf32> to vector<8x8xf32>
    %cst_21 = arith.constant dense<0.000000e+00> : vector<8x8xf32>
    %69 = tpu.matmul %66, %67, %cst_21 {dimension_numbers = #tpu.dot_dimension_numbers<[1], [1], [0], [0], [0, 0, 1, 0], [], []>} : vector<8x8xf32>, vector<8x8xf32>, vector<8x8xf32> -> vector<8x8xf32>
    %cst_22 = arith.constant dense<0xFF800000> : vector<8xf32>
    %70 = vector.multi_reduction <maximumf>, %69, %cst_22 [1] : vector<8x8xf32> to vector<8xf32>
    %71 = vector.shape_cast %70 : vector<8xf32> to vector<8x1xf32>
    %72 = vector.broadcast %71 : vector<8x1xf32> to vector<8x8xf32>
    %73 = arith.subf %69, %72 : vector<8x8xf32>
    %74 = math.exp %73 : vector<8x8xf32>
    %cst_23 = arith.constant dense<0.000000e+00> : vector<8xf32>
    %75 = vector.multi_reduction <add>, %74, %cst_23 [1] : vector<8x8xf32> to vector<8xf32>
    %76 = vector.shape_cast %75 : vector<8xf32> to vector<8x1xf32>
    %77 = vector.broadcast %76 : vector<8x1xf32> to vector<8x8xf32>
    %78 = arith.divf %74, %77 : vector<8x8xf32>
    %cst_24 = arith.constant dense<0.000000e+00> : vector<8x8xf32>
    %79 = tpu.matmul %78, %68, %cst_24 {dimension_numbers = #tpu.dot_dimension_numbers<[1], [0], [0], [1], [0, 0, 1, 1], [], []>} : vector<8x8xf32>, vector<8x8xf32>, vector<8x8xf32> -> vector<8x8xf32>
    %80 = vector.extract_strided_slice %6 {offsets = [8, 8], sizes = [8, 8], strides = [1, 1]} : vector<16x32xf32> to vector<8x8xf32>
    %81 = vector.extract_strided_slice %7 {offsets = [8, 8], sizes = [8, 8], strides = [1, 1]} : vector<16x32xf32> to vector<8x8xf32>
    %82 = vector.extract_strided_slice %8 {offsets = [8, 8], sizes = [8, 8], strides = [1, 1]} : vector<16x32xf32> to vector<8x8xf32>
    %cst_25 = arith.constant dense<0.000000e+00> : vector<8x8xf32>
    %83 = tpu.matmul %80, %81, %cst_25 {dimension_numbers = #tpu.dot_dimension_numbers<[1], [1], [0], [0], [0, 0, 1, 0], [], []>} : vector<8x8xf32>, vector<8x8xf32>, vector<8x8xf32> -> vector<8x8xf32>
    %cst_26 = arith.constant dense<0xFF800000> : vector<8xf32>
    %84 = vector.multi_reduction <maximumf>, %83, %cst_26 [1] : vector<8x8xf32> to vector<8xf32>
    %85 = vector.shape_cast %84 : vector<8xf32> to vector<8x1xf32>
    %86 = vector.broadcast %85 : vector<8x1xf32> to vector<8x8xf32>
    %87 = arith.subf %83, %86 : vector<8x8xf32>
    %88 = math.exp %87 : vector<8x8xf32>
    %cst_27 = arith.constant dense<0.000000e+00> : vector<8xf32>
    %89 = vector.multi_reduction <add>, %88, %cst_27 [1] : vector<8x8xf32> to vector<8xf32>
    %90 = vector.shape_cast %89 : vector<8xf32> to vector<8x1xf32>
    %91 = vector.broadcast %90 : vector<8x1xf32> to vector<8x8xf32>
    %92 = arith.divf %88, %91 : vector<8x8xf32>
    %cst_28 = arith.constant dense<0.000000e+00> : vector<8x8xf32>
    %93 = tpu.matmul %92, %82, %cst_28 {dimension_numbers = #tpu.dot_dimension_numbers<[1], [0], [0], [1], [0, 0, 1, 1], [], []>} : vector<8x8xf32>, vector<8x8xf32>, vector<8x8xf32> -> vector<8x8xf32>
    %94 = vector.extract_strided_slice %6 {offsets = [8, 16], sizes = [8, 8], strides = [1, 1]} : vector<16x32xf32> to vector<8x8xf32>
    %95 = vector.extract_strided_slice %7 {offsets = [8, 16], sizes = [8, 8], strides = [1, 1]} : vector<16x32xf32> to vector<8x8xf32>
    %96 = vector.extract_strided_slice %8 {offsets = [8, 16], sizes = [8, 8], strides = [1, 1]} : vector<16x32xf32> to vector<8x8xf32>
    %cst_29 = arith.constant dense<0.000000e+00> : vector<8x8xf32>
    %97 = tpu.matmul %94, %95, %cst_29 {dimension_numbers = #tpu.dot_dimension_numbers<[1], [1], [0], [0], [0, 0, 1, 0], [], []>} : vector<8x8xf32>, vector<8x8xf32>, vector<8x8xf32> -> vector<8x8xf32>
    %cst_30 = arith.constant dense<0xFF800000> : vector<8xf32>
    %98 = vector.multi_reduction <maximumf>, %97, %cst_30 [1] : vector<8x8xf32> to vector<8xf32>
    %99 = vector.shape_cast %98 : vector<8xf32> to vector<8x1xf32>
    %100 = vector.broadcast %99 : vector<8x1xf32> to vector<8x8xf32>
    %101 = arith.subf %97, %100 : vector<8x8xf32>
    %102 = math.exp %101 : vector<8x8xf32>
    %cst_31 = arith.constant dense<0.000000e+00> : vector<8xf32>
    %103 = vector.multi_reduction <add>, %102, %cst_31 [1] : vector<8x8xf32> to vector<8xf32>
    %104 = vector.shape_cast %103 : vector<8xf32> to vector<8x1xf32>
    %105 = vector.broadcast %104 : vector<8x1xf32> to vector<8x8xf32>
    %106 = arith.divf %102, %105 : vector<8x8xf32>
    %cst_32 = arith.constant dense<0.000000e+00> : vector<8x8xf32>
    %107 = tpu.matmul %106, %96, %cst_32 {dimension_numbers = #tpu.dot_dimension_numbers<[1], [0], [0], [1], [0, 0, 1, 1], [], []>} : vector<8x8xf32>, vector<8x8xf32>, vector<8x8xf32> -> vector<8x8xf32>
    %108 = vector.extract_strided_slice %6 {offsets = [8, 24], sizes = [8, 8], strides = [1, 1]} : vector<16x32xf32> to vector<8x8xf32>
    %109 = vector.extract_strided_slice %7 {offsets = [8, 24], sizes = [8, 8], strides = [1, 1]} : vector<16x32xf32> to vector<8x8xf32>
    %110 = vector.extract_strided_slice %8 {offsets = [8, 24], sizes = [8, 8], strides = [1, 1]} : vector<16x32xf32> to vector<8x8xf32>
    %cst_33 = arith.constant dense<0.000000e+00> : vector<8x8xf32>
    %111 = tpu.matmul %108, %109, %cst_33 {dimension_numbers = #tpu.dot_dimension_numbers<[1], [1], [0], [0], [0, 0, 1, 0], [], []>} : vector<8x8xf32>, vector<8x8xf32>, vector<8x8xf32> -> vector<8x8xf32>
    %cst_34 = arith.constant dense<0xFF800000> : vector<8xf32>
    %112 = vector.multi_reduction <maximumf>, %111, %cst_34 [1] : vector<8x8xf32> to vector<8xf32>
    %113 = vector.shape_cast %112 : vector<8xf32> to vector<8x1xf32>
    %114 = vector.broadcast %113 : vector<8x1xf32> to vector<8x8xf32>
    %115 = arith.subf %111, %114 : vector<8x8xf32>
    %116 = math.exp %115 : vector<8x8xf32>
    %cst_35 = arith.constant dense<0.000000e+00> : vector<8xf32>
    %117 = vector.multi_reduction <add>, %116, %cst_35 [1] : vector<8x8xf32> to vector<8xf32>
    %118 = vector.shape_cast %117 : vector<8xf32> to vector<8x1xf32>
    %119 = vector.broadcast %118 : vector<8x1xf32> to vector<8x8xf32>
    %120 = arith.divf %116, %119 : vector<8x8xf32>
    %cst_36 = arith.constant dense<0.000000e+00> : vector<8x8xf32>
    %121 = tpu.matmul %120, %110, %cst_36 {dimension_numbers = #tpu.dot_dimension_numbers<[1], [0], [0], [1], [0, 0, 1, 1], [], []>} : vector<8x8xf32>, vector<8x8xf32>, vector<8x8xf32> -> vector<8x8xf32>
    %122 = tpu.concatenate %79, %93, %107, %121 in 1 : vector<8x8xf32>, vector<8x8xf32>, vector<8x8xf32>, vector<8x8xf32> -> vector<8x32xf32>
    %123 = tpu.concatenate %65, %122 in 0 : vector<8x32xf32>, vector<8x32xf32> -> vector<16x32xf32>
    %c0_37 = arith.constant 0 : index
    %c0_38 = arith.constant 0 : index
    %124 = vector.load %arg3[%c0_37, %c0_38] : memref<32x32xf32, #tpu.memory_space<vmem>>, vector<32x32xf32>
    %cst_39 = arith.constant dense<0.000000e+00> : vector<16x32xf32>
    %125 = tpu.matmul %123, %124, %cst_39 {dimension_numbers = #tpu.dot_dimension_numbers<[1], [0], [0], [1], [0, 0, 1, 1], [], []>} : vector<16x32xf32>, vector<32x32xf32>, vector<16x32xf32> -> vector<16x32xf32>
    %c0_40 = arith.constant 0 : index
    %c0_41 = arith.constant 0 : index
    %126 = vector.load %arg4[%c0_40, %c0_41] : memref<1x32xf32, #tpu.memory_space<vmem>>, vector<1x32xf32>
    %127 = vector.broadcast %126 : vector<1x32xf32> to vector<16x32xf32>
    %128 = arith.addf %125, %127 : vector<16x32xf32>
    %c0_42 = arith.constant 0 : index
    %c0_43 = arith.constant 0 : index
    %129 = vector.load %arg5[%c0_42, %c0_43] : memref<16x32xf32, #tpu.memory_space<vmem>>, vector<16x32xf32>
    tpu.vector_store %arg5[%c0_42, %c0_43], %128 {strides = array<i32>} : memref<16x32xf32, #tpu.memory_space<vmem>>, vector<16x32xf32>,
    return
  }
}

</mosaic_0001>

<bundles_post_ra>
// kernel: tpu_custom_call.1
= control target key start
LH: loop header
LB: loop body
LE: loop exit
PB: predicated region body
PF: predicated region fallthrough
CT: control target
= control target key end

     0   :  { %10 = vsyncpa [#allocation3], 0  ;;  %s2284_s0 = inlined_call_operand.hbm [shape: f32[16,96], index: 0, kind: input, shape index: {}]   ;;  %s2285_s1 = inlined_call_operand.hbm [shape: f32[96,96], index: 1, kind: input, shape index: {}]   ;;  %s2286_s2 = inlined_call_operand.vmem [shape: f32[1,96], index: 2, kind: input, shape index: {}]   ;;  %s2287_s3 = inlined_call_operand.hbm [shape: f32[32,32], index: 3, kind: input, shape index: {}]   ;;  %s2288_s4 = inlined_call_operand.vmem [shape: f32[1,32], index: 4, kind: input, shape index: {}]   ;;  %s2289_s5 = inlined_call_operand.hbm [shape: f32[16,32], index: 5, kind: output, shape index: {}]  }
   0x1   :  { %11 = vsyncpa [#allocation6], 0 }
   0x2   :  { %12 = vsyncpa [#allocation4], 0  ;;  %s2008_s18 = smov [#allocation5]   ;;  %s2009_s20 = smov [#allocation2]  }
   0x3   :  { %s30_s19 = sshll.u32 %s2008_s18, 4  ;;  %s18_s21 = sshll.u32 %s2009_s20, 4  ;;  %s31_s19 = int_to_ptr.vmem [resolvable:$true] %s30_s19  ;;  %s2059_s21 = int_to_ptr.vmem [resolvable:$true] %s18_s21 }
   0x4   :  { %s1914_s24 = scalar_lea.hbm %s2285_s1, 1536 }
   0x5   :  { %p1915_p0 = scmp.ne.s32.totalorder %s2285_s1, %s1914_s24  ;;  %p1918_p1 = scmp.lt.u32.totalorder %s1914_s24, %s2285_s1 }
   0x7   :  { %p1920_p2 = pnand %p1918_p1, %p1915_p0 }
   0x9   :  { %1923 = shalt.err (!%p1920_p2)
}
   0xa   :  { %s1924_s29 = scalar_lea.vmem %s31_s19, 1536  ;;  %p1929_p4 = scmp.lt.s32.totalorder %s31_s19, %s31_s19 }
   0xb   :  { %p1925_p3 = scmp.ne.s32.totalorder %s31_s19, %s1924_s29  ;;  %p1930_p5 = scmp.lt.s32.totalorder %s1924_s29, %s1924_s29 }
   0xd   :  { %p1931_p6 = por %p1930_p5, %p1929_p4 }
   0xf   :  { %p1932_p7 = pnand %p1931_p6, %p1925_p3 }
  0x11   :  { %1935 = shalt.err (!%p1932_p7)
}
  0x12   :  { %s2010_s30 = smov 128   ;;  %s2011_s6 = smov 8  }
  0x13   :  { %36 = dma.hbm_to_vmem [thread:$0]  %s2285_s1, 1536, %s31_s19, [#allocation6], %s2010_s30, %s2010_s30, %s2011_s6  }
  0x14   :  { %s1936_s11 = scalar_lea.hbm %s2284_s0, 256 }
  0x15   :  { %p1937_p8 = scmp.ne.s32.totalorder %s2284_s0, %s1936_s11  ;;  %p1940_p9 = scmp.lt.u32.totalorder %s1936_s11, %s2284_s0 }
  0x17   :  { %p1942_p10 = pnand %p1940_p9, %p1937_p8 }
  0x19   :  { %1945 = shalt.err (!%p1942_p10)
}
  0x1a   :  { %s1946_s16 = scalar_lea.vmem %s2059_s21, 256  ;;  %p1951_p12 = scmp.lt.s32.totalorder %s2059_s21, %s2059_s21 }
  0x1b   :  { %p1947_p11 = scmp.ne.s32.totalorder %s2059_s21, %s1946_s16  ;;  %p1952_p13 = scmp.lt.s32.totalorder %s1946_s16, %s1946_s16 }
  0x1d   :  { %p1953_p0 = por %p1952_p13, %p1951_p12 }
  0x1f   :  { %p1954_p1 = pnand %p1953_p0, %p1947_p11 }
  0x21   :  { %1957 = shalt.err (!%p1954_p1)
}
  0x22   :  { %24 = dma.hbm_to_vmem [thread:$0]  %s2284_s0, 256, %s2059_s21, [#allocation3], %s2010_s30, %s2010_s30, %s2011_s6  }
  0x23   :  { %s2012_s18 = smov [#allocation7]   ;;  %s1958_s23 = scalar_lea.hbm %s2287_s3, 512 }
  0x24   :  { %s44_s19 = sshll.u32 %s2012_s18, 4  ;;  %p1959_p2 = scmp.ne.s32.totalorder %s2287_s3, %s1958_s23  ;;  %s45_s19 = int_to_ptr.vmem [resolvable:$true] %s44_s19 }
  0x25   :  { %p1962_p3 = scmp.lt.u32.totalorder %s1958_s23, %s2287_s3 }
  0x27   :  { %p1964_p4 = pnand %p1962_p3, %p1959_p2 }
  0x29   :  { %1967 = shalt.err (!%p1964_p4)
}
  0x2a   :  { %s1968_s28 = scalar_lea.vmem %s45_s19, 512  ;;  %p1973_p6 = scmp.lt.s32.totalorder %s45_s19, %s45_s19 }
  0x2b   :  { %p1969_p5 = scmp.ne.s32.totalorder %s45_s19, %s1968_s28  ;;  %p1974_p7 = scmp.lt.s32.totalorder %s1968_s28, %s1968_s28 }
  0x2d   :  { %p1975_p8 = por %p1974_p7, %p1973_p6 }
  0x2f   :  { %p1976_p9 = pnand %p1975_p8, %p1969_p5 }
  0x31   :  { %1979 = shalt.err (!%p1976_p9)
}
  0x32   :  { %50 = dma.hbm_to_vmem [thread:$0]  %s2287_s3, 512, %s45_s19, [#allocation6], %s2010_s30, %s2010_s30, %s2011_s6  }
  0x33   :  { %2002 = dma.done.wait [#allocation3], 256  }
  0x34   :  { %2003 = vsyncadd [#allocation3], 4294967040 }
  0x35   :  { %2004 = dma.done.wait [#allocation6], 2048  }
  0x36   :  { %2005 = vsyncadd [#allocation6], 4294965248  ;;  %v64_v0 = vld [vmem:[#allocation5] sm:$0xff]  ;;  %v65_v1 = vld [vmem:[#allocation5 + $0x8] sm:$0xff]  ;;  %vm83_vm0 = vcmask 785408   ;;  %v2013_v20 = vmov 0.0  }
  0x37   :  { %v66_v2 = vld [vmem:[#allocation5 + $0x10] sm:$0xff]  ;;  %v1829_v3 = vpack.c.bf16 %v65_v1, %v64_v0  ;;  %v67_v4 = vld [vmem:[#allocation5 + $0x18] sm:$0xff]  ;;  %v68_v6 = vld [vmem:[#allocation5 + $0x20] sm:$0xff]  ;;  %1738 = vmatprep.subr.mxu1 %v2013_v20  ;;  %vm2014_vm1 = vmmov 0   ;;  %s2015_s7 = smov 64   ;;  %s2016_s8 = smov 96  }
  0x38   :  { %v1833_v5 = vpack.c.bf16 %v67_v4, %v66_v2  ;;  %v69_v7 = vld [vmem:[#allocation5 + $0x28] sm:$0xff]  ;;  %v62_v8 = vld [vmem:[#allocation2] sm:$0xff]  ;;  %v71_v11 = vld [vmem:[#allocation5 + $0x38] sm:$0xff]  ;;  %1740 = vmatprep.mubr.msk.f32.mxu1 %vm2014_vm1, %v2013_v20  ;;  %s2017_s9 = smov 88   ;;  %vm168_vm2 = vcmask 64512   ;;  %s2019_s10 = smov 80  }
  0x39   :  { %1830 = vmatprep.subr.bf16.mxu0 %v1829_v3  ;;  %v1837_v9 = vpack.c.bf16 %v69_v7, %v68_v6  ;;  %1735 = vmatprep.mubr.msk.f32.mxu0 %vm83_vm0, %v62_v8  ;;  %v70_v10 = vld [vmem:[#allocation5 + $0x30] sm:$0xff]  ;;  %v72_v13 = vld [vmem:[#allocation5 + $0x40] sm:$0xff]  ;;  %v73_v14 = vld [vmem:[#allocation5 + $0x48] sm:$0xff]  ;;  %s2020_s11 = smov 120   ;;  %s2021_s12 = smov 112   ;;  %vm838_vm3 = vcmask 130048  }
  0x3a   :  { %1832 = vmatpush3.bf16.msra.mxu0 %v1829_v3  ;;  %v1841_v12 = vpack.c.bf16 %v71_v11, %v70_v10  ;;  %v1845_v15 = vpack.c.bf16 %v73_v14, %v72_v13  ;;  %v74_v16 = vld [vmem:[#allocation5 + $0x50] sm:$0xff]  ;;  %v75_v17 = vld [vmem:[#allocation5 + $0x58] sm:$0xff]  ;;  %s2022_s13 = smov 48   ;;  %s2023_s14 = smov 72   ;;  %vm840_vm4 = vcmask 195584   ;;  %vm1527_vm5 = vcmask 261120  }
  0x3b   :  { %1834 = vmatprep.subr.bf16.mxu0 %v1833_v5  ;;  %v1849_v18 = vpack.c.bf16 %v75_v17, %v74_v16  ;;  %v63_v19 = vld [vmem:[#allocation2 + $0x8] sm:$0xff]  ;;  %v1629_v21 = vld [vmem:[%s2286_s2] ss:$0 sm:$0xff]  ;;  %s2018_s2 = smov 56   ;;  %s2024_s15 = smov 104  }
  0x3c   :  { %s2025_s16 = smov 40   ;;  %s2026_s1 = smov 16  }
  0x3d   :  { %s2027_s17 = smov 24   ;;  %s2028_s20 = smov [#allocation8]  }
  0x3e   :  { %1836 = vmatpush3.bf16.msra.mxu0 %v1833_v5  ;;  %s1616_s22 = sshll.u32 %s2028_s20, 4  ;;  %s1617_s22 = int_to_ptr.vmem [resolvable:$true] %s1616_s22 }
  0x3f   :  { %1838 = vmatprep.subr.bf16.mxu0 %v1837_v9  ;;  %s1980_s23 = scalar_lea.vmem %s1617_s22, 256  ;;  %p1985_p11 = scmp.lt.s32.totalorder %s1617_s22, %s1617_s22 }
  0x40   :  { %p1981_p10 = scmp.ne.s32.totalorder %s1617_s22, %s1980_s23  ;;  %p1986_p12 = scmp.lt.s32.totalorder %s1980_s23, %s1980_s23 }
  0x42   :  { %1840 = vmatpush3.bf16.msra.mxu0 %v1837_v9  ;;  %p1987_p13 = por %p1986_p12, %p1985_p11 }
  0x43   :  { %1842 = vmatprep.subr.bf16.mxu0 %v1841_v12 }
  0x44   :  { %p1988_p0 = pnand %p1987_p13, %p1981_p10 }
  0x46   :  { %1844 = vmatpush3.bf16.msra.mxu0 %v1841_v12 }
  0x47   :  { %1846 = vmatprep.subr.bf16.mxu0 %v1845_v15 }
  0x4a   :  { %1848 = vmatpush3.bf16.msra.mxu0 %v1845_v15 }
  0x4b   :  { %1850 = vmatprep.subr.bf16.mxu0 %v1849_v18 }
  0x4e   :  { %1852 = vmatpush3.bf16.msra.mxu0 %v1849_v18 }
  0x4f   :  { %1778 = vmatprep.subr.mxu0 %v2013_v20 }
  0x51   :  { %1736 = vmatmul.mubr.msk.f32.vlgmr.msra.gmra.mrb[0].mxu0 %vm83_vm0, %v63_v19 }
  0x52   :  { %1780 = vmatprep.mubr.msk.f32.mxu0 %vm2014_vm1, %v2013_v20 }
 0x124   :  { %v1737_v22 = vpop.f32.mrb[0].mxu0 }
 0x125   :  { %v2122_v23 = vadd.f32 %v1737_v22, %v1629_v21  ;;  %v156_v24 = vpop.f32.mrb[1].mxu0 }
 0x126   :  { %v2124_v25 = vadd.f32 %v1629_v21, %v156_v24 }
 0x128   :  { %254 = vrot.lane.b32.xlu1 %v2124_v25, %s2015_s7  ;;  %166 = vrot.lane.b32.xlu0 %v2124_v25, %s2016_s8 }
 0x12c   :  { %332 = vrot.lane.b32.xlu1 %v2124_v25, %s2017_s9 }
 0x19a   :  { %v167_v26 = vpop.permute.xlu0 %166  ;;  %v255_v27 = vpop.permute.xlu1 %254 }
 0x19b   :  { %1739 = vmatpush3.xpose.msk.msra.mxu1 %vm168_vm2, %v167_v26 }
 0x19c   :  { %1743 = vmatprep.subr.mxu1 %v2013_v20 }
 0x19e   :  { %1741 = vmatmul.mubr.msk.f32.vlgmr.msra.gmra.mrb[0].mxu1 %vm168_vm2, %v2124_v25  ;;  %v333_v36 = vpop.permute.xlu1 %332 }
 0x19f   :  { %1744 = vmatpush3.msra.mxu1 %v255_v27  ;;  %1745 = vmatprep.mubr.msk.f32.mxu1 %vm2014_vm1, %v2013_v20 }
 0x1a0   :  { %1748 = vmatprep.subr.mxu1 %v2013_v20 }
 0x271   :  { %v239_v28 = vpop.f32.mrb[0].mxu1 }
 0x272   :  { %v1742_v29 = vpop.f32.mrb[1].mxu1  ;;  %v243_v30 = vsel %vm168_vm2, %v239_v28, -inf }
 0x273   :  { %244 = vmax.xlane.f32.xlu0 %v243_v30 }
 0x289   :  { %419 = vrot.lane.b32.xlu0 %v2124_v25, %s2018_s2 }
 0x28d   :  { %497 = vrot.lane.b32.xlu0 %v2124_v25, %s2019_s10 }
 0x300   :  { %v245_v31 = vpop.xlane.xlu0 %244 }
 0x301   :  { %v246_v32 = vsub.f32 %v239_v28, %v245_v31 }
 0x303   :  { %v247_v33 = vmul.f32 1.442695, %v246_v32 }
 0x304   :  { %v420_v41 = vpop.permute.xlu0 %419 }
 0x305   :  { %1882 = vpow2.f32 %v247_v33 }
 0x308   :  { %v498_v52 = vpop.permute.xlu0 %497 }
 0x30f   :  { %v1883_v34 = vpop.eup %1882 }
 0x310   :  { %v249_v35 = vsel %vm168_vm2, %v1883_v34, 0.0 }
 0x311   :  { %250 = vadd.xlane.f32.xlu1 %v249_v35 }
 0x322   :  { %330 = vrot.lane.b32.xlu1 %v2124_v25, %s2020_s11 }
 0x39e   :  { %v251_v37 = vpop.xlane.xlu1 %250 }
 0x39f   :  { %1884 = vrcp.f32 %v251_v37 }
 0x3a2   :  { %v331_v40 = vpop.permute.xlu1 %330 }
 0x3a9   :  { %v1885_v38 = vpop.eup %1884 }
 0x3aa   :  { %v253_v39 = vmul.f32 %v1885_v38, %v1883_v34 }
 0x3ac   :  { %1746 = vmatmul.mubr.msk.f32.vlgmr.msra.gmra.mrb[2].mxu1 %vm168_vm2, %v253_v39 }
 0x3ad   :  { %1749 = vmatpush3.xpose.msk.msra.mxu1 %vm168_vm2, %v333_v36  ;;  %1750 = vmatprep.mubr.msk.f32.mxu1 %vm2014_vm1, %v2013_v20 }
 0x3ae   :  { %1753 = vmatprep.subr.mxu1 %v2013_v20 }
 0x3b0   :  { %1751 = vmatmul.mubr.msk.f32.vlgmr.msra.gmra.mrb[4].mxu1 %vm168_vm2, %v331_v40 }
 0x3b1   :  { %1754 = vmatpush3.msra.mxu1 %v420_v41  ;;  %1755 = vmatprep.mubr.msk.f32.mxu1 %vm2014_vm1, %v2013_v20 }
 0x3b2   :  { %1758 = vmatprep.subr.mxu1 %v2013_v20 }
 0x47f   :  { %v2156_v42 = vpop.f32.mrb[2].mxu1 }
 0x480   :  { %v1747_v43 = vpop.f32.mrb[3].mxu1 }
 0x483   :  { %v404_v44 = vpop.f32.mrb[4].mxu1 }
 0x484   :  { %v1752_v45 = vpop.f32.mrb[5].mxu1  ;;  %v408_v46 = vsel %vm168_vm2, %v404_v44, -inf }
 0x485   :  { %409 = vmax.xlane.f32.xlu1 %v408_v46 }
 0x512   :  { %v410_v47 = vpop.xlane.xlu1 %409 }
 0x513   :  { %v411_v48 = vsub.f32 %v404_v44, %v410_v47 }
 0x515   :  { %v412_v49 = vmul.f32 1.442695, %v411_v48 }
 0x517   :  { %1886 = vpow2.f32 %v412_v49 }
 0x521   :  { %v1887_v50 = vpop.eup %1886 }
 0x522   :  { %v414_v51 = vsel %vm168_vm2, %v1887_v50, 0.0 }
 0x523   :  { %415 = vadd.xlane.f32.xlu0 %v414_v51 }
 0x539   :  { %495 = vrot.lane.b32.xlu0 %v2124_v25, %s2021_s12 }
 0x5b0   :  { %v416_v53 = vpop.xlane.xlu0 %415 }
 0x5b1   :  { %1888 = vrcp.f32 %v416_v53 }
 0x5b4   :  { %v496_v56 = vpop.permute.xlu0 %495 }
 0x5bb   :  { %v1889_v54 = vpop.eup %1888 }
 0x5bc   :  { %v418_v55 = vmul.f32 %v1889_v54, %v1887_v50 }
 0x5be   :  { %1756 = vmatmul.mubr.msk.f32.vlgmr.msra.gmra.mrb[6].mxu1 %vm168_vm2, %v418_v55 }
 0x5bf   :  { %1759 = vmatpush3.xpose.msk.msra.mxu1 %vm168_vm2, %v498_v52  ;;  %1760 = vmatprep.mubr.msk.f32.mxu1 %vm2014_vm1, %v2013_v20 }
 0x5c0   :  { %1763 = vmatprep.subr.mxu1 %v2013_v20 }
 0x5c2   :  { %1761 = vmatmul.mubr.msk.f32.vlgmr.msra.gmra.mrb[8].mxu1 %vm168_vm2, %v496_v56 }
 0x5c3   :  { %1765 = vmatprep.mubr.msk.f32.mxu1 %vm2014_vm1, %v2013_v20 }
 0x691   :  { %v2169_v57 = vpop.f32.mrb[6].mxu1 }
 0x692   :  { %v1757_v58 = vpop.f32.mrb[7].mxu1 }
 0x695   :  { %v569_v59 = vpop.f32.mrb[8].mxu1 }
 0x696   :  { %v1762_v60 = vpop.f32.mrb[9].mxu1  ;;  %v573_v61 = vsel %vm168_vm2, %v569_v59, -inf }
 0x697   :  { %574 = vmax.xlane.f32.xlu1 %v573_v61 }
 0x6a8   :  { %584 = vrot.lane.b32.xlu1 %v2124_v25, %s2022_s13 }
 0x6ac   :  { %662 = vrot.lane.b32.xlu1 %v2124_v25, %s2023_s14 }
 0x6b0   :  { %660 = vrot.lane.b32.xlu1 %v2124_v25, %s2024_s15 }
 0x6b4   :  { %843 = vrot.lane.b32.xlu1 %v2122_v23, %s2016_s8 }
 0x6b8   :  { %1008 = vrot.lane.b32.xlu1 %v2122_v23, %s2017_s9 }
 0x6bc   :  { %1173 = vrot.lane.b32.xlu1 %v2122_v23, %s2019_s10 }
 0x6c0   :  { %1171 = vrot.lane.b32.xlu1 %v2122_v23, %s2021_s12 }
 0x6c4   :  { %1338 = vrot.lane.b32.xlu1 %v2122_v23, %s2023_s14 }
 0x6c8   :  { %1336 = vrot.lane.b32.xlu1 %v2122_v23, %s2024_s15 }
 0x724   :  { %v575_v62 = vpop.xlane.xlu1 %574 }
 0x725   :  { %v576_v63 = vsub.f32 %v569_v59, %v575_v62 }
 0x727   :  { %v577_v0 = vmul.f32 1.442695, %v576_v63 }
 0x728   :  { %v585_v1 = vpop.permute.xlu1 %584 }
 0x729   :  { %1890 = vpow2.f32 %v577_v0  ;;  %1764 = vmatpush3.msra.mxu1 %v585_v1 }
 0x72a   :  { %1768 = vmatprep.subr.mxu1 %v2013_v20 }
 0x72c   :  { %v663_v2 = vpop.permute.xlu1 %662 }
 0x730   :  { %v661_v3 = vpop.permute.xlu1 %660 }
 0x733   :  { %v1891_v4 = vpop.eup %1890 }
 0x734   :  { %v844_v5 = vpop.permute.xlu1 %843  ;;  %v579_v6 = vsel %vm168_vm2, %v1891_v4, 0.0 }
 0x735   :  { %580 = vadd.xlane.f32.xlu0 %v579_v6  ;;  %1779 = vmatpush3.xpose.msk.msra.mxu0 %vm168_vm2, %v844_v5 }
 0x736   :  { %1788 = vmatprep.subr.mxu0 %v2013_v20 }
 0x738   :  { %1781 = vmatmul.mubr.msk.f32.vlgmr.msra.gmra.mrb[2].mxu0 %vm168_vm2, %v2122_v23  ;;  %v1009_v7 = vpop.permute.xlu1 %1008 }
 0x739   :  { %1789 = vmatpush3.xpose.msk.msra.mxu0 %vm168_vm2, %v1009_v7  ;;  %1790 = vmatprep.mubr.msk.f32.mxu0 %vm2014_vm1, %v2013_v20 }
 0x73a   :  { %1798 = vmatprep.subr.mxu0 %v2013_v20 }
 0x73c   :  { %v1174_v8 = vpop.permute.xlu1 %1173 }
 0x740   :  { %v1172_v9 = vpop.permute.xlu1 %1171 }
 0x744   :  { %v1339_v12 = vpop.permute.xlu1 %1338 }
 0x748   :  { %v1337_v14 = vpop.permute.xlu1 %1336 }
 0x74b   :  { %1006 = vrot.lane.b32.xlu0 %v2122_v23, %s2020_s11 }
 0x7c2   :  { %v581_v10 = vpop.xlane.xlu0 %580 }
 0x7c3   :  { %1892 = vrcp.f32 %v581_v10 }
 0x7c6   :  { %v1007_v11 = vpop.permute.xlu0 %1006 }
 0x7c7   :  { %1791 = vmatmul.mubr.msk.f32.vlgmr.msra.gmra.mrb[4].mxu0 %vm168_vm2, %v1007_v11 }
 0x7c8   :  { %1799 = vmatpush3.xpose.msk.msra.mxu0 %vm168_vm2, %v1174_v8  ;;  %1800 = vmatprep.mubr.msk.f32.mxu0 %vm2014_vm1, %v2013_v20 }
 0x7c9   :  { %1808 = vmatprep.subr.mxu0 %v2013_v20 }
 0x7cb   :  { %1801 = vmatmul.mubr.msk.f32.vlgmr.msra.gmra.mrb[6].mxu0 %vm168_vm2, %v1172_v9 }
 0x7cc   :  { %1809 = vmatpush3.xpose.msk.msra.mxu0 %vm168_vm2, %v1339_v12  ;;  %1810 = vmatprep.mubr.msk.f32.mxu0 %vm2014_vm1, %v2013_v20 }
 0x7cd   :  { %v1893_v13 = vpop.eup %1892 }
 0x7ce   :  { %v583_v15 = vmul.f32 %v1893_v13, %v1891_v4 }
 0x7cf   :  { %1811 = vmatmul.mubr.msk.f32.vlgmr.msra.gmra.mrb[8].mxu0 %vm168_vm2, %v1337_v14 }
 0x7d0   :  { %1766 = vmatmul.mubr.msk.f32.vlgmr.msra.gmra.mrb[10].mxu1 %vm168_vm2, %v583_v15 }
 0x7d1   :  { %1769 = vmatpush3.xpose.msk.msra.mxu1 %vm168_vm2, %v663_v2  ;;  %1770 = vmatprep.mubr.msk.f32.mxu1 %vm2014_vm1, %v2013_v20 }
 0x7d2   :  { %1773 = vmatprep.subr.mxu1 %v2013_v20 }
 0x7d4   :  { %1771 = vmatmul.mubr.msk.f32.vlgmr.msra.gmra.mrb[12].mxu1 %vm168_vm2, %v661_v3 }
 0x7d5   :  { %1775 = vmatprep.mubr.msk.f32.mxu1 %vm2014_vm1, %v2013_v20 }
 0x80b   :  { %v915_v16 = vpop.f32.mrb[2].mxu0 }
 0x80c   :  { %v1782_v17 = vpop.f32.mrb[3].mxu0  ;;  %v919_v18 = vsel %vm168_vm2, %v915_v16, -inf }
 0x80d   :  { %920 = vmax.xlane.f32.xlu0 %v919_v18  ;;  %v1517_v17 = vld [vmem:[#allocation7 + $0x8] sm:$0xff] }
 0x89a   :  { %v921_v19 = vpop.xlane.xlu0 %920  ;;  %v1080_v21 = vpop.f32.mrb[4].mxu0 }
 0x89b   :  { %v922_v22 = vsub.f32 %v915_v16, %v921_v19  ;;  %v1792_v24 = vpop.f32.mrb[5].mxu0  ;;  %v1084_v26 = vsel %vm168_vm2, %v1080_v21, -inf  ;;  %v1516_v16 = vld [vmem:[#allocation7] sm:$0xff]  ;;  %v1518_v19 = vld [vmem:[#allocation7 + $0x10] sm:$0xff] }
 0x89c   :  { %1085 = vmax.xlane.f32.xlu0 %v1084_v26  ;;  %v1853_v18 = vpack.c.bf16 %v1517_v17, %v1516_v16 }
 0x89d   :  { %v923_v27 = vmul.f32 1.442695, %v922_v22 }
 0x89e   :  { %v1245_v28 = vpop.f32.mrb[6].mxu0  ;;  %1854 = vmatprep.subr.bf16.mxu0 %v1853_v18 }
 0x89f   :  { %1894 = vpow2.f32 %v923_v27  ;;  %v1802_v29 = vpop.f32.mrb[7].mxu0  ;;  %v1249_v40 = vsel %vm168_vm2, %v1245_v28, -inf  ;;  %1856 = vmatpush3.bf16.msra.mxu0 %v1853_v18 }
 0x8a2   :  { %v1410_v30 = vpop.f32.mrb[8].mxu0 }
 0x8a3   :  { %v656_v31 = vpop.f32.mrb[10].mxu1  ;;  %v1812_v32 = vpop.f32.mrb[9].mxu0  ;;  %v1414_v33 = vsel %vm168_vm2, %v1410_v30, -inf }
 0x8a4   :  { %1415 = vmax.xlane.f32.xlu0 %v1414_v33  ;;  %v1767_v34 = vpop.f32.mrb[11].mxu1 }
 0x8a7   :  { %v734_v35 = vpop.f32.mrb[12].mxu1 }
 0x8a8   :  { %v1772_v36 = vpop.f32.mrb[13].mxu1  ;;  %v738_v37 = vsel %vm168_vm2, %v734_v35, -inf }
 0x8a9   :  { %v2219_v38 = vpop.eup %1894  ;;  %739 = vmax.xlane.f32.xlu1 %v738_v37 }
 0x8aa   :  { %v925_v39 = vsel %vm168_vm2, %v2219_v38, 0.0 }
 0x8ab   :  { %926 = vadd.xlane.f32.xlu0 %v925_v39 }
 0x8ad   :  { %1250 = vmax.xlane.f32.xlu1 %v1249_v40 }
 0x929   :  { %v1086_v41 = vpop.xlane.xlu0 %1085 }
 0x92a   :  { %v1087_v43 = vsub.f32 %v1080_v21, %v1086_v41  ;;  %v1519_v21 = vld [vmem:[#allocation7 + $0x18] sm:$0xff] }
 0x92b   :  { %v1857_v24 = vpack.c.bf16 %v1519_v21, %v1518_v19 }
 0x92c   :  { %v1088_v44 = vmul.f32 1.442695, %v1087_v43 }
 0x92d   :  { %1858 = vmatprep.subr.bf16.mxu0 %v1857_v24 }
 0x92e   :  { %1896 = vpow2.f32 %v1088_v44  ;;  %1860 = vmatpush3.bf16.msra.mxu0 %v1857_v24 }
 0x931   :  { %v1416_v45 = vpop.xlane.xlu0 %1415 }
 0x932   :  { %v1417_v46 = vsub.f32 %v1410_v30, %v1416_v45 }
 0x934   :  { %v1418_v47 = vmul.f32 1.442695, %v1417_v46 }
 0x936   :  { %1898 = vpow2.f32 %v1418_v47  ;;  %v740_v48 = vpop.xlane.xlu1 %739  ;;  %v1656_v47 = vld [vmem:[%s2288_s4] ss:$0 sm:$0xff] }
 0x937   :  { %v741_v59 = vsub.f32 %v734_v35, %v740_v48 }
 0x938   :  { %v1897_v49 = vpop.eup %1896 }
 0x939   :  { %v1090_v50 = vsel %vm168_vm2, %v1897_v49, 0.0  ;;  %v742_v60 = vmul.f32 1.442695, %v741_v59 }
 0x93a   :  { %1091 = vadd.xlane.f32.xlu1 %v1090_v50  ;;  %v1251_v51 = vpop.xlane.xlu1 %1250 }
 0x93b   :  { %v1252_v52 = vsub.f32 %v1245_v28, %v1251_v51 }
 0x93d   :  { %v1253_v53 = vmul.f32 1.442695, %v1252_v52 }
 0x93f   :  { %1900 = vpow2.f32 %v1253_v53 }
 0x940   :  { %v1899_v54 = vpop.eup %1898  ;;  %1902 = vpow2.f32 %v742_v60 }
 0x941   :  { %v1420_v55 = vsel %vm168_vm2, %v1899_v54, 0.0 }
 0x942   :  { %1421 = vadd.xlane.f32.xlu1 %v1420_v55 }
 0x949   :  { %v1901_v56 = vpop.eup %1900 }
 0x94a   :  { %v1255_v58 = vsel %vm168_vm2, %v1901_v56, 0.0  ;;  %v1903_v61 = vpop.eup %1902 }
 0x94b   :  { %1256 = vadd.xlane.f32.xlu0 %v1255_v58  ;;  %v744_v62 = vsel %vm168_vm2, %v1903_v61, 0.0 }
 0x953   :  { %930 = vrot.lane.b32.xlu1 %v2122_v23, %s2015_s7 }
 0x961   :  { %749 = vrot.lane.b32.xlu0 %v2124_v25, %s2025_s16  ;;  %v927_v25 = vpop.xlane.xlu0 %926 }
 0x965   :  { %1260 = vrot.lane.b32.xlu0 %v2122_v23, %s2022_s13 }
 0x969   :  { %826 = vrot.lane.b32.xlu0 %v2169_v57, %s2011_s6 }
 0x977   :  { %745 = vadd.xlane.f32.xlu1 %v744_v62 }
 0x988   :  { %1095 = vrot.lane.b32.xlu1 %v2122_v23, %s2018_s2 }
 0x98c   :  { %1425 = vrot.lane.b32.xlu1 %v2122_v23, %s2025_s16 }
 0x990   :  { %830 = vrot.lane.b32.xlu1 %v656_v31, %s2026_s1 }
 0x9c7   :  { %v1092_v1 = vpop.xlane.xlu1 %1091 }
 0x9cf   :  { %v1422_v57 = vpop.xlane.xlu1 %1421 }
 0x9d3   :  { %v931_v2 = vpop.permute.xlu1 %930 }
 0x9d8   :  { %v1257_v63 = vpop.xlane.xlu0 %1256 }
 0x9dc   :  { %v750_v0 = vpop.permute.xlu0 %749 }
 0x9dd   :  { %1774 = vmatpush3.msra.mxu1 %v750_v0 }
 0x9de   :  { %1783 = vmatprep.subr.mxu1 %v2013_v20 }
 0x9e0   :  { %v1261_v11 = vpop.permute.xlu0 %1260 }
 0x9e4   :  { %v827_v34 = vpop.permute.xlu0 %826 }
 0x9e5   :  { %v837_v36 = vsel %vm168_vm2, %v2156_v42, %v827_v34 }
 0xa04   :  { %v746_v3 = vpop.xlane.xlu1 %745 }
 0xa05   :  { %1904 = vrcp.f32 %v746_v3 }
 0xa06   :  { %1906 = vrcp.f32 %v927_v25 }
 0xa07   :  { %1908 = vrcp.f32 %v1092_v1 }
 0xa08   :  { %1910 = vrcp.f32 %v1257_v63  ;;  %v1096_v8 = vpop.permute.xlu1 %1095 }
 0xa09   :  { %1912 = vrcp.f32 %v1422_v57 }
 0xa0c   :  { %v1426_v14 = vpop.permute.xlu1 %1425 }
 0xa0f   :  { %v1905_v4 = vpop.eup %1904 }
 0xa10   :  { %v748_v5 = vmul.f32 %v1905_v4, %v1903_v61  ;;  %v1907_v23 = vpop.eup %1906  ;;  %v831_v35 = vpop.permute.xlu1 %830 }
 0xa11   :  { %v929_v6 = vmul.f32 %v1907_v23, %v2219_v38  ;;  %v1909_v7 = vpop.eup %1908  ;;  %v839_v37 = vsel %vm838_vm3, %v837_v36, %v831_v35 }
 0xa12   :  { %1776 = vmatmul.mubr.msk.f32.vlgmr.msra.gmra.mrb[14].mxu1 %vm168_vm2, %v748_v5  ;;  %v1094_v9 = vmul.f32 %v1909_v7, %v1897_v49  ;;  %v1911_v10 = vpop.eup %1910 }
 0xa13   :  { %1784 = vmatpush3.msra.mxu1 %v931_v2  ;;  %1785 = vmatprep.mubr.msk.f32.mxu1 %vm2014_vm1, %v2013_v20  ;;  %v1259_v12 = vmul.f32 %v1911_v10, %v1901_v56  ;;  %v1913_v13 = vpop.eup %1912 }
 0xa14   :  { %1793 = vmatprep.subr.mxu1 %v2013_v20  ;;  %v1424_v15 = vmul.f32 %v1913_v13, %v1899_v54 }
 0xa16   :  { %1786 = vmatmul.mubr.msk.f32.vlgmr.msra.gmra.mrb[16].mxu1 %vm168_vm2, %v929_v6 }
 0xa17   :  { %1794 = vmatpush3.msra.mxu1 %v1096_v8  ;;  %1795 = vmatprep.mubr.msk.f32.mxu1 %vm2014_vm1, %v2013_v20 }
 0xa18   :  { %1803 = vmatprep.subr.mxu1 %v2013_v20 }
 0xa1a   :  { %1796 = vmatmul.mubr.msk.f32.vlgmr.msra.gmra.mrb[18].mxu1 %vm168_vm2, %v1094_v9 }
 0xa1b   :  { %1804 = vmatpush3.msra.mxu1 %v1261_v11  ;;  %1805 = vmatprep.mubr.msk.f32.mxu1 %vm2014_vm1, %v2013_v20 }
 0xa1c   :  { %1813 = vmatprep.subr.mxu1 %v2013_v20 }
 0xa1e   :  { %1806 = vmatmul.mubr.msk.f32.vlgmr.msra.gmra.mrb[20].mxu1 %vm168_vm2, %v1259_v12 }
 0xa1f   :  { %1814 = vmatpush3.msra.mxu1 %v1426_v14  ;;  %1815 = vmatprep.mubr.msk.f32.mxu1 %vm2014_vm1, %v2013_v20 }
 0xa22   :  { %1816 = vmatmul.mubr.msk.f32.vlgmr.msra.gmra.mrb[22].mxu1 %vm168_vm2, %v1424_v15 }
 0xae5   :  { %v821_v22 = vpop.f32.mrb[14].mxu1 }
 0xae6   :  { %834 = vrot.lane.b32.xlu1 %v821_v22, %s2027_s17  ;;  %v1777_v26 = vpop.f32.mrb[15].mxu1 }
 0xae9   :  { %v1002_v27 = vpop.f32.mrb[16].mxu1 }
 0xaea   :  { %v1787_v28 = vpop.f32.mrb[17].mxu1 }
 0xaed   :  { %v1167_v20 = vpop.f32.mrb[18].mxu1 }
 0xaee   :  { %1502 = vrot.lane.b32.xlu0 %v1167_v20, %s2011_s6  ;;  %v1797_v29 = vpop.f32.mrb[19].mxu1 }
 0xaf1   :  { %v1332_v30 = vpop.f32.mrb[20].mxu1 }
 0xaf2   :  { %1506 = vrot.lane.b32.xlu0 %v1332_v30, %s2026_s1  ;;  %v1807_v31 = vpop.f32.mrb[21].mxu1 }
 0xaf5   :  { %v1497_v32 = vpop.f32.mrb[22].mxu1 }
 0xaf6   :  { %1510 = vrot.lane.b32.xlu1 %v1497_v32, %s2027_s17  ;;  %v1817_v33 = vpop.f32.mrb[23].mxu1 }
 0xb58   :  { %v835_v38 = vpop.permute.xlu1 %834 }
 0xb59   :  { %v841_v39 = vsel %vm840_vm4, %v839_v37, %v835_v38 }
 0xb5a   :  { %1826 = vmatprep.mubr.msk.f32.mxu0 %vm1527_vm5, %v841_v39 }
 0xb60   :  { %v1503_v40 = vpop.permute.xlu0 %1502 }
 0xb61   :  { %v1513_v43 = vsel %vm168_vm2, %v1002_v27, %v1503_v40 }
 0xb64   :  { %v1507_v41 = vpop.permute.xlu0 %1506 }
 0xb65   :  { %v1514_v44 = vsel %vm838_vm3, %v1513_v43, %v1507_v41 }
 0xb68   :  { %v1511_v45 = vpop.permute.xlu1 %1510 }
 0xb69   :  { %v1515_v46 = vsel %vm840_vm4, %v1514_v44, %v1511_v45 }
 0xb6a   :  { %1827 = vmatmul.mubr.msk.f32.vlgmr.msra.gmra.mrb[10].mxu0 %vm1527_vm5, %v1515_v46 }
 0xc3d   :  { %v1828_v42 = vpop.f32.mrb[10].mxu0 }
 0xc3e   :  { %v1606_v48 = vadd.f32 %v1828_v42, %v1656_v47  ;;  %v1600_v49 = vpop.f32.mrb[11].mxu0 }
 0xc3f   :  { %v1601_v50 = vadd.f32 %v1656_v47, %v1600_v49 }
 0xc40   :  { %1610 = vst.msk [vmem:[#allocation8 + $0x8] sm:$0xff] %vm1527_vm5, %v1606_v48 }
 0xc41   :  { %1609 = vst.msk [vmem:[#allocation8] sm:$0xff] %vm1527_vm5, %v1601_v50 }
 0xc42   :  { %1991 = shalt.err (!%p1988_p0)
}
 0xc43   :  { %s1992_s25 = scalar_lea.hbm %s2289_s5, 256 }
 0xc44   :  { %p1993_p1 = scmp.ne.s32.totalorder %s2289_s5, %s1992_s25  ;;  %p1996_p2 = scmp.lt.u32.totalorder %s1992_s25, %s2289_s5 }
 0xc46   :  { %p1998_p3 = pnand %p1996_p2, %p1993_p1 }
 0xc48   :  { %2001 = shalt.err (!%p1998_p3)
}
 0xc49   :  { %1622 = dma.vmem_to_hbm [thread:$0]  %s1617_s22, 256, %s2289_s5, [#allocation4], %s2010_s30, %s2010_s30, %s2011_s6  }
 0xc4a   :  { %2006 = dma.done.wait [#allocation4], 256  }
 0xc4b   :  { %2007 = vsyncadd [#allocation4], 4294967040 }
 0xc4c   :  { %1626 = vsyncpa [#allocation3], 1 }
 0xc4d   :  { %1627 = vsyncpa [#allocation6], 1 }
 0xc4e   :  { %1628 = vsyncpa [#allocation4], 1 }

</bundles_post_ra>
